<compile_context>
chip_gen: v5e
topology: v5e:2x2
jax: 0.10.0
libtpu: 0.0.40
codegen_flags: <defaults>
</compile_context>

<pallas_src>
import jax
import jax.numpy as jnp
from jax.experimental import pallas as pl
from jax.experimental.pallas import tpu as pltpu


def _hbm_copy_kernel(x_ref, o_ref, sem):
    # Single whole-array HBM->HBM DMA.  Both refs live in pl.ANY (HBM); the
    # TensorCore only issues the descriptor and waits -- no VMEM round trip,
    # no per-grid-step overhead, no tiling constraints.
    cp = pltpu.make_async_copy(x_ref, o_ref, sem)
    cp.start()
    cp.wait()


def _pallas_identity_copy(x):
    return pl.pallas_call(
        _hbm_copy_kernel,
        out_shape=jax.ShapeDtypeStruct(x.shape, x.dtype),
        in_specs=[pl.BlockSpec(memory_space=pl.ANY)],
        out_specs=pl.BlockSpec(memory_space=pl.ANY),
        scratch_shapes=[pltpu.SemaphoreType.DMA],
    )(x)


def dummy_layer_norm(x, normalized_shape=None, eps=1e-5, *, materialize=False):
    """Pallas TPU implementation of DummyLayerNorm.forward: returns x unchanged.

    normalized_shape / eps mirror the PyTorch __init__ signature and are
    ignored, exactly like the placeholder module.

    materialize=False (default): zero-cost identity -- returns x itself
        (0 bytes of HBM traffic; the correct cost for an identity op).
    materialize=True: returns a fresh buffer produced by a single HBM->HBM
        DMA issued from a Pallas kernel (pl.ANY refs, no VMEM staging).
    """
    if not materialize or x.size == 0:
        return x
    return _pallas_identity_copy(x)


if __name__ == "__main__":
    key = jax.random.PRNGKey(0)
    batch, seq, hidden = 2, 8, 32   # shapes implied by the GPT placeholder usage
    x = jax.random.normal(key, (batch, seq, hidden), dtype=jnp.float32)
    x_host = jax.device_get(x)

    # Default zero-cost path (what the placeholder module semantically does).
    y_fast = dummy_layer_norm(x, normalized_shape=hidden, eps=1e-5)

    # Pallas path: exercises the HBM->HBM DMA kernel once.
    y_copy = dummy_layer_norm(x, normalized_shape=hidden, eps=1e-5, materialize=True)
    y_copy = jax.block_until_ready(y_copy)

    for y in (y_fast, y_copy):
        assert y.shape == (batch, seq, hidden) and y.dtype == jnp.float32
        assert (jax.device_get(y) == x_host).all()
    print("KERNEL_OK")
</pallas_src>

<mosaic_0001>
module attributes {stable_mosaic.version = 11 : i64} {
  func.func @_hbm_copy_kernel(%arg0: memref<2x8x32xf32, #tpu.memory_space<any>>, %arg1: memref<2x8x32xf32, #tpu.memory_space<any>>, %arg2: memref<!tpu.dma_semaphore, #tpu.memory_space<semaphore_mem>>) attributes {dimension_semantics = [], scalar_prefetch = 0 : i64, scratch_operands = 1 : i64, tpu.core_type = #tpu.core_type<tc>} {
    tpu.enqueue_dma source(%arg0 : memref<2x8x32xf32, #tpu.memory_space<any>>) target(%arg1 : memref<2x8x32xf32, #tpu.memory_space<any>>) target_semaphore(%arg2 : memref<!tpu.dma_semaphore, #tpu.memory_space<semaphore_mem>>)
    tpu.wait_dma2 semaphore(%arg2 : memref<!tpu.dma_semaphore, #tpu.memory_space<semaphore_mem>>) src(%arg0 : memref<2x8x32xf32, #tpu.memory_space<any>>) dst(%arg1 : memref<2x8x32xf32, #tpu.memory_space<any>>)
    return
  }
}

</mosaic_0001>

<bundles_post_ra>
// kernel: tpu_custom_call.1
= control target key start
LH: loop header
LB: loop body
LE: loop exit
PB: predicated region body
PF: predicated region fallthrough
CT: control target
= control target key end

     0   :  { %s33_s12 = smov [#allocation2]   ;;  %s34_s13 = smov [#allocation3]   ;;  %s52_s0 = inlined_call_operand.hbm [shape: f32[2,8,32], index: 0, kind: input, shape index: {}]   ;;  %s53_s1 = inlined_call_operand.hbm [shape: f32[2,8,32], index: 1, kind: output, shape index: {}]  }
   0x1   :  { %s10_s8 = sshll.u32 %s52_s0, 4  ;;  %s12_s11 = sshll.u32 %s53_s1, 4  ;;  %s11_s8 = int_to_ptr.hbm [resolvable:$true] %s10_s8  ;;  %s13_s11 = int_to_ptr.hbm [resolvable:$true] %s12_s11 }
   0x2   :  { %s35_s14 = smov 0  }
   0x3   :  { %16 = dma.general %s11_s8, 256, %s13_s11, %s33_s12, %s34_s13, [#allocation4], %s35_s14, 0  }
   0x4   :  { %31 = dma.done.wait [#allocation2], 256 }
   0x5   :  { %32 = vsyncadd [#allocation2], 4294967040 }
   0x6   :  { %21 = vsyncmov [#allocation2] }
   0x9   :  { %s22_s15 = vpop.sfrf %21 }
   0xa   :  { %p27_p0 = scmp.ne.s32.totalorder %s22_s15, 0 }
   0xc   :  { %26 = shalt.err (%p27_p0)  }

</bundles_post_ra>
